<compile_context>
chip_gen: v7x
topology: tpu7x:2x2x1
jax: 0.10.0
libtpu: 0.0.40
codegen_flags: <defaults>
</compile_context>

<pallas_src>
import functools

import jax
import jax.numpy as jnp
from jax.experimental import pallas as pl
from jax.experimental.pallas import tpu as pltpu

LANE = 128
ROW_ALIGN = 16        # bf16-native sublane tile; also a multiple of the 8-row f32 sublane
HIDDEN = 128


def _round_up(x, m):
    return ((x + m - 1) // m) * m


def policy_mlp_kernel(x_ref, w1_ref, b1_ref, w2_ref, b2_ref, w3_ref, b3_ref,
                      o_ref):
    # x_ref: [TB, S] f32; weights bf16; biases f32; o_ref: [TB, A_pad] bf16
    x = x_ref[...].astype(jnp.bfloat16)   # in-kernel cast (free under DMA/MXU)

    # Layer 1: Linear(state_dim, 128) + ReLU  (MXU bf16, f32 accumulate)
    h1 = jnp.dot(x, w1_ref[...], preferred_element_type=jnp.float32)
    h1 = jnp.maximum(h1 + b1_ref[...], 0.0)                       # f32 [TB,128]

    # Layer 2: Linear(128, 128) + ReLU
    h2 = jnp.dot(h1.astype(jnp.bfloat16), w2_ref[...],
                 preferred_element_type=jnp.float32)
    h2 = jnp.maximum(h2 + b2_ref[...], 0.0)                       # f32 [TB,128]

    # Layer 3: Linear(128, action_dim padded to 128 lanes)
    logits = jnp.dot(h2.astype(jnp.bfloat16), w3_ref[...],
                     preferred_element_type=jnp.float32)
    # Padded columns of b3 are -1e30 (f32 logit path) -> exp underflows to 0.
    logits = logits + b3_ref[...]                                 # f32 [TB,A_pad]

    # Numerically stable softmax over the last (lane) dim.
    m = jnp.max(logits, axis=-1, keepdims=True)
    e = jnp.exp(logits - m)
    denom = jnp.sum(e, axis=-1, keepdims=True)
    inv = pl.reciprocal(denom, approx=True)
    inv = inv * (2.0 - denom * inv)          # one Newton step -> near-exact norm
    o_ref[...] = (e * inv).astype(o_ref.dtype)


@functools.partial(jax.jit, static_argnames=("block_b",))
def policy_network_forward(states, params, *, block_b=4096):
    """states: [B, state_dim] f32 -> action probabilities [B, action_dim] f32."""
    w1, b1, w2, b2, w3, b3 = params
    B, S = states.shape
    H = w1.shape[1]
    A = w3.shape[1]

    A_pad = _round_up(max(A, 1), LANE)

    # Batch tile: as large as block_b, but cap at ~B/4 so large batches get
    # >=4 grid steps (keeps both v7x TensorCores busy). Rows aligned to 16.
    quarter = _round_up(max(1, -(-B // 4)), ROW_ALIGN)
    TB = max(ROW_ALIGN, min(block_b, quarter))
    B_pad = _round_up(B, TB)

    # x is passed straight through as f32; only row-pad when B % TB != 0.
    x_in = states if B_pad == B else jnp.pad(states, ((0, B_pad - B), (0, 0)))

    cdt = jnp.bfloat16  # MXU operand dtype (f32 accumulation in-kernel)
    w1_c = w1.astype(cdt)                                   # (S, H), K unpadded
    w2_c = w2.astype(cdt)                                   # (H, H)
    w3_p = jnp.zeros((H, A_pad), cdt).at[:, :A].set(w3.astype(cdt))
    # Biases stay f32 (VPU work). Padded action columns get a huge negative
    # bias so they vanish under softmax.
    b1_p = b1.reshape(1, H).astype(jnp.float32)
    b2_p = b2.reshape(1, H).astype(jnp.float32)
    b3_p = jnp.full((1, A_pad), -1e30, jnp.float32).at[0, :A].set(
        b3.reshape(-1).astype(jnp.float32))

    grid = (B_pad // TB,)

    flops = 2 * B_pad * (S * H + H * H + H * A_pad)
    bytes_accessed = (x_in.size * 4 + w1_c.size * 2 + w2_c.size * 2 +
                      w3_p.size * 2 +
                      (b1_p.size + b2_p.size + b3_p.size) * 4 +
                      B_pad * A_pad * 2)
    cost = pl.CostEstimate(flops=flops,
                           transcendentals=B_pad * A_pad,
                           bytes_accessed=bytes_accessed)

    out_padded = pl.pallas_call(
        policy_mlp_kernel,
        out_shape=jax.ShapeDtypeStruct((B_pad, A_pad), jnp.bfloat16),
        grid_spec=pltpu.PrefetchScalarGridSpec(
            num_scalar_prefetch=0,
            grid=grid,
            in_specs=[
                pl.BlockSpec((TB, S), lambda i: (i, 0)),        # x: tiled batch, f32
                pl.BlockSpec((S, H), lambda i: (0, 0)),         # w1 resident
                pl.BlockSpec((1, H), lambda i: (0, 0)),         # b1 resident
                pl.BlockSpec((H, H), lambda i: (0, 0)),         # w2 resident
                pl.BlockSpec((1, H), lambda i: (0, 0)),         # b2 resident
                pl.BlockSpec((H, A_pad), lambda i: (0, 0)),     # w3 resident
                pl.BlockSpec((1, A_pad), lambda i: (0, 0)),     # b3 resident
            ],
            out_specs=pl.BlockSpec((TB, A_pad), lambda i: (i, 0)),
        ),
        compiler_params=pltpu.CompilerParams(
            dimension_semantics=("parallel",),        # v7x: 2 TCs share batch
            vmem_limit_bytes=32 * 1024 * 1024,        # portable across v5e/v6e/v7x
        ),
        cost_estimate=cost,
    )(x_in, w1_c, b1_p, w2_c, b2_p, w3_p, b3_p)

    return out_padded[:B, :A].astype(jnp.float32)


def init_params(key, state_dim, action_dim, hidden=HIDDEN):
    """Deterministic synthetic init (uniform, Kaiming-like scale), f32."""
    ks = jax.random.split(key, 6)

    def lin(kw, kb, fan_in, fan_out):
        bound = 1.0 / jnp.sqrt(jnp.float32(fan_in))
        w = jax.random.uniform(kw, (fan_in, fan_out), jnp.float32,
                               minval=-bound, maxval=bound)
        b = jax.random.uniform(kb, (fan_out,), jnp.float32,
                               minval=-bound, maxval=bound)
        return w, b

    w1, b1 = lin(ks[0], ks[1], state_dim, hidden)
    w2, b2 = lin(ks[2], ks[3], hidden, hidden)
    w3, b3 = lin(ks[4], ks[5], hidden, action_dim)
    return (w1, b1, w2, b2, w3, b3)


def reference_forward(states, params):
    """Pure-JAX f32 reference of the PyTorch module."""
    w1, b1, w2, b2, w3, b3 = params
    h1 = jnp.maximum(states @ w1 + b1, 0.0)
    h2 = jnp.maximum(h1 @ w2 + b2, 0.0)
    logits = h2 @ w3 + b3
    return jax.nn.softmax(logits, axis=-1)


if __name__ == "__main__":
    key = jax.random.PRNGKey(0)
    k_params, k_states = jax.random.split(key)

    batch = 8
    state_dim = 32
    action_dim = 8

    params = init_params(k_params, state_dim, action_dim)
    states = jax.random.normal(k_states, (batch, state_dim), dtype=jnp.float32)

    probs = policy_network_forward(states, params)
    probs = jax.block_until_ready(probs)

    assert probs.shape == (batch, action_dim)

    # Rows sum to ~1 (bf16 output quantization -> relaxed tolerance).
    row_sums = jnp.sum(probs, axis=-1)
    assert bool(jnp.all(jnp.abs(row_sums - 1.0) < 1e-2)), row_sums

    # Match pure-JAX f32 reference (bf16 operand/output quantization allowed).
    ref = reference_forward(states, params)
    assert bool(jnp.all(jnp.isfinite(probs)))
    assert bool(jnp.max(jnp.abs(probs - ref)) < 3e-2), jnp.max(jnp.abs(probs - ref))

    print("KERNEL_OK")
</pallas_src>

<mosaic_0001>
module attributes {stable_mosaic.version = 11 : i64} {
  func.func @policy_mlp_kernel(%arg0: i32, %arg1: memref<16x32xf32, #tpu.memory_space<vmem>>, %arg2: memref<32x128xbf16, #tpu.memory_space<vmem>>, %arg3: memref<1x128xf32, #tpu.memory_space<vmem>>, %arg4: memref<128x128xbf16, #tpu.memory_space<vmem>>, %arg5: memref<1x128xf32, #tpu.memory_space<vmem>>, %arg6: memref<128x128xbf16, #tpu.memory_space<vmem>>, %arg7: memref<1x128xf32, #tpu.memory_space<vmem>>, %arg8: memref<16x128xbf16, #tpu.memory_space<vmem>>) attributes {dimension_semantics = [#tpu.dimension_semantics<parallel>], iteration_bounds = array<i64: 1>, scalar_prefetch = 0 : i64, scratch_operands = 0 : i64, tpu.core_type = #tpu.core_type<tc>, window_params = [{transform_indices = @transform_0, window_bounds = array<i64: 16, 32>}, {pipeline_mode = #tpu.pipeline_mode<synchronous>, transform_indices = @transform_1, window_bounds = array<i64: 32, 128>}, {pipeline_mode = #tpu.pipeline_mode<synchronous>, transform_indices = @transform_2, window_bounds = array<i64: 1, 128>}, {pipeline_mode = #tpu.pipeline_mode<synchronous>, transform_indices = @transform_3, window_bounds = array<i64: 128, 128>}, {pipeline_mode = #tpu.pipeline_mode<synchronous>, transform_indices = @transform_4, window_bounds = array<i64: 1, 128>}, {pipeline_mode = #tpu.pipeline_mode<synchronous>, transform_indices = @transform_5, window_bounds = array<i64: 128, 128>}, {pipeline_mode = #tpu.pipeline_mode<synchronous>, transform_indices = @transform_6, window_bounds = array<i64: 1, 128>}, {transform_indices = @transform_7, window_bounds = array<i64: 16, 128>}]} {
    %c0 = arith.constant 0 : index
    %c0_0 = arith.constant 0 : index
    %0 = vector.load %arg1[%c0, %c0_0] : memref<16x32xf32, #tpu.memory_space<vmem>>, vector<16x32xf32>
    %1 = arith.truncf %0 : vector<16x32xf32> to vector<16x32xbf16>
    %c0_1 = arith.constant 0 : index
    %c0_2 = arith.constant 0 : index
    %2 = vector.load %arg2[%c0_1, %c0_2] : memref<32x128xbf16, #tpu.memory_space<vmem>>, vector<32x128xbf16>
    %cst = arith.constant dense<0.000000e+00> : vector<16x128xf32>
    %3 = tpu.matmul %1, %2, %cst {dimension_numbers = #tpu.dot_dimension_numbers<[1], [0], [0], [1], [0, 0, 1, 1], [], []>} : vector<16x32xbf16>, vector<32x128xbf16>, vector<16x128xf32> -> vector<16x128xf32>
    %c0_3 = arith.constant 0 : index
    %c0_4 = arith.constant 0 : index
    %4 = vector.load %arg3[%c0_3, %c0_4] : memref<1x128xf32, #tpu.memory_space<vmem>>, vector<1x128xf32>
    %5 = vector.broadcast %4 : vector<1x128xf32> to vector<16x128xf32>
    %6 = arith.addf %3, %5 : vector<16x128xf32>
    %cst_5 = arith.constant 0.000000e+00 : f32
    %7 = vector.broadcast %cst_5 : f32 to vector<16x128xf32>
    %8 = arith.maximumf %6, %7 : vector<16x128xf32>
    %9 = arith.truncf %8 : vector<16x128xf32> to vector<16x128xbf16>
    %c0_6 = arith.constant 0 : index
    %c0_7 = arith.constant 0 : index
    %10 = vector.load %arg4[%c0_6, %c0_7] : memref<128x128xbf16, #tpu.memory_space<vmem>>, vector<128x128xbf16>
    %cst_8 = arith.constant dense<0.000000e+00> : vector<16x128xf32>
    %11 = tpu.matmul %9, %10, %cst_8 {dimension_numbers = #tpu.dot_dimension_numbers<[1], [0], [0], [1], [0, 0, 1, 1], [], []>} : vector<16x128xbf16>, vector<128x128xbf16>, vector<16x128xf32> -> vector<16x128xf32>
    %c0_9 = arith.constant 0 : index
    %c0_10 = arith.constant 0 : index
    %12 = vector.load %arg5[%c0_9, %c0_10] : memref<1x128xf32, #tpu.memory_space<vmem>>, vector<1x128xf32>
    %13 = vector.broadcast %12 : vector<1x128xf32> to vector<16x128xf32>
    %14 = arith.addf %11, %13 : vector<16x128xf32>
    %cst_11 = arith.constant 0.000000e+00 : f32
    %15 = vector.broadcast %cst_11 : f32 to vector<16x128xf32>
    %16 = arith.maximumf %14, %15 : vector<16x128xf32>
    %17 = arith.truncf %16 : vector<16x128xf32> to vector<16x128xbf16>
    %c0_12 = arith.constant 0 : index
    %c0_13 = arith.constant 0 : index
    %18 = vector.load %arg6[%c0_12, %c0_13] : memref<128x128xbf16, #tpu.memory_space<vmem>>, vector<128x128xbf16>
    %cst_14 = arith.constant dense<0.000000e+00> : vector<16x128xf32>
    %19 = tpu.matmul %17, %18, %cst_14 {dimension_numbers = #tpu.dot_dimension_numbers<[1], [0], [0], [1], [0, 0, 1, 1], [], []>} : vector<16x128xbf16>, vector<128x128xbf16>, vector<16x128xf32> -> vector<16x128xf32>
    %c0_15 = arith.constant 0 : index
    %c0_16 = arith.constant 0 : index
    %20 = vector.load %arg7[%c0_15, %c0_16] : memref<1x128xf32, #tpu.memory_space<vmem>>, vector<1x128xf32>
    %21 = vector.broadcast %20 : vector<1x128xf32> to vector<16x128xf32>
    %22 = arith.addf %19, %21 : vector<16x128xf32>
    %cst_17 = arith.constant dense<0xFF800000> : vector<16xf32>
    %23 = vector.multi_reduction <maximumf>, %22, %cst_17 [1] : vector<16x128xf32> to vector<16xf32>
    %24 = vector.shape_cast %23 : vector<16xf32> to vector<16x1xf32>
    %25 = vector.broadcast %24 : vector<16x1xf32> to vector<16x128xf32>
    %26 = arith.subf %22, %25 : vector<16x128xf32>
    %27 = math.exp %26 : vector<16x128xf32>
    %cst_18 = arith.constant dense<0.000000e+00> : vector<16xf32>
    %28 = vector.multi_reduction <add>, %27, %cst_18 [1] : vector<16x128xf32> to vector<16xf32>
    %29 = vector.shape_cast %28 : vector<16xf32> to vector<16x1xf32>
    %30 = tpu.reciprocal %29 {approx = true} : vector<16x1xf32> -> vector<16x1xf32>
    %31 = arith.mulf %29, %30 : vector<16x1xf32>
    %cst_19 = arith.constant 2.000000e+00 : f32
    %32 = vector.broadcast %cst_19 : f32 to vector<16x1xf32>
    %33 = arith.subf %32, %31 : vector<16x1xf32>
    %34 = arith.mulf %30, %33 : vector<16x1xf32>
    %35 = vector.broadcast %34 : vector<16x1xf32> to vector<16x128xf32>
    %36 = arith.mulf %27, %35 : vector<16x128xf32>
    %37 = arith.truncf %36 : vector<16x128xf32> to vector<16x128xbf16>
    %c0_20 = arith.constant 0 : index
    %c0_21 = arith.constant 0 : index
    %38 = vector.load %arg8[%c0_20, %c0_21] : memref<16x128xbf16, #tpu.memory_space<vmem>>, vector<16x128xbf16>
    tpu.vector_store %arg8[%c0_20, %c0_21], %37 {strides = array<i32>} : memref<16x128xbf16, #tpu.memory_space<vmem>>, vector<16x128xbf16>,
    return
  }
  func.func @transform_0(%arg0: i32) -> (i32, i32) {
    %c0_i32 = arith.constant 0 : i32
    %c0_i32_0 = arith.constant 0 : i32
    return %arg0, %c0_i32 : i32, i32
  }
  func.func @transform_1(%arg0: i32) -> (i32, i32) {
    %c0_i32 = arith.constant 0 : i32
    %c0_i32_0 = arith.constant 0 : i32
    %c0_i32_1 = arith.constant 0 : i32
    return %c0_i32, %c0_i32_0 : i32, i32
  }
  func.func @transform_2(%arg0: i32) -> (i32, i32) {
    %c0_i32 = arith.constant 0 : i32
    %c0_i32_0 = arith.constant 0 : i32
    %c0_i32_1 = arith.constant 0 : i32
    return %c0_i32, %c0_i32_0 : i32, i32
  }
  func.func @transform_3(%arg0: i32) -> (i32, i32) {
    %c0_i32 = arith.constant 0 : i32
    %c0_i32_0 = arith.constant 0 : i32
    %c0_i32_1 = arith.constant 0 : i32
    return %c0_i32, %c0_i32_0 : i32, i32
  }
  func.func @transform_4(%arg0: i32) -> (i32, i32) {
    %c0_i32 = arith.constant 0 : i32
    %c0_i32_0 = arith.constant 0 : i32
    %c0_i32_1 = arith.constant 0 : i32
    return %c0_i32, %c0_i32_0 : i32, i32
  }
  func.func @transform_5(%arg0: i32) -> (i32, i32) {
    %c0_i32 = arith.constant 0 : i32
    %c0_i32_0 = arith.constant 0 : i32
    %c0_i32_1 = arith.constant 0 : i32
    return %c0_i32, %c0_i32_0 : i32, i32
  }
  func.func @transform_6(%arg0: i32) -> (i32, i32) {
    %c0_i32 = arith.constant 0 : i32
    %c0_i32_0 = arith.constant 0 : i32
    %c0_i32_1 = arith.constant 0 : i32
    return %c0_i32, %c0_i32_0 : i32, i32
  }
  func.func @transform_7(%arg0: i32) -> (i32, i32) {
    %c0_i32 = arith.constant 0 : i32
    %c0_i32_0 = arith.constant 0 : i32
    return %arg0, %c0_i32 : i32, i32
  }
}

</mosaic_0001>

<bundles_post_ra>
// kernel: policy_network_forward.1
= control target key start
LH: loop header
LB: loop body
LE: loop exit
PB: predicated region body
PF: predicated region fallthrough
CT: control target
= control target key end

     0   :  { %v494_v0 = vmov 0.0   ;;  %vm495_vm0 = vmmov 0   ;;  %vm53_vm1 = vcmask 261120   ;;  %s632_s1 = inlined_call_operand.vmem [shape: bf16[32,128], index: 1, kind: input, shape index: {}]   ;;  %s633_s0 = inlined_call_operand.vmem [shape: f32[16,32], index: 0, kind: input, shape index: {}]   ;;  %s634_s3 = inlined_call_operand.vmem [shape: bf16[128,128], index: 3, kind: input, shape index: {}]   ;;  %s635_s5 = inlined_call_operand.vmem [shape: bf16[128,128], index: 5, kind: input, shape index: {}]   ;;  %s636_s2 = inlined_call_operand.vmem [shape: f32[1,128], index: 2, kind: input, shape index: {}]   ;;  %s637_s4 = inlined_call_operand.vmem [shape: f32[1,128], index: 4, kind: input, shape index: {}]   ;;  %s638_s6 = inlined_call_operand.vmem [shape: f32[1,128], index: 6, kind: input, shape index: {}]   ;;  %s639_s7 = inlined_call_operand.vmem [shape: bf16[16,128], index: 7, kind: output, shape index: {}]  }
   0x1   :  { %418 = vmatprep.subr.bf16.mxu0 %v494_v0  ;;  %v468_v1 = vld [vmem:[%s632_s1] sm:$0xff]   ;;  %422 = vmatprep.mubr.msk.bf16.mxu0 %vm495_vm0, %v494_v0  ;;  %v469_v2 = vld [vmem:[%s632_s1 + $0x8] sm:$0xff]   ;;  %v472_v8 = vld [vmem:[%s634_s3 + $0x10] sm:$0xff]  }
   0x2   :  { %426 = vmatprep.subr.bf16.mxu1 %v494_v0  ;;  %442 = vmatprep.mubr.msk.bf16.mxu1 %vm495_vm0, %v494_v0  ;;  %v27_v3 = vld [vmem:[%s633_s0] sm:$0xff]  ;;  %v28_v4 = vld [vmem:[%s633_s0 + $0x8] sm:$0xff]  ;;  %v473_v9 = vld [vmem:[%s634_s3 + $0x18] sm:$0xff]  }
   0x3   :  { %419 = vmatpush3.bf16.msra.mxu0 %v468_v1  ;;  %v470_v5 = vld [vmem:[%s634_s3] sm:$0xff]   ;;  %v29_v6 = vpack.c.bf16 %v28_v4, %v27_v3  ;;  %v471_v7 = vld [vmem:[%s634_s3 + $0x8] sm:$0xff]   ;;  %v476_v12 = vld [vmem:[%s634_s3 + $0x30] sm:$0xff]  }
   0x4   :  { %420 = vmatprep.subr.bf16.mxu0 %v494_v0  ;;  %427 = vmatpush3.bf16.msra.mxu1 %v470_v5  ;;  %v474_v10 = vld [vmem:[%s634_s3 + $0x20] sm:$0xff]   ;;  %v475_v11 = vld [vmem:[%s634_s3 + $0x28] sm:$0xff]   ;;  %v477_v13 = vld [vmem:[%s634_s3 + $0x38] sm:$0xff]  }
   0x5   :  { %428 = vmatprep.subr.bf16.mxu1 %v494_v0  ;;  %v478_v14 = vld [vmem:[%s635_s5] sm:$0xff]   ;;  %v479_v15 = vld [vmem:[%s635_s5 + $0x8] sm:$0xff]   ;;  %v480_v16 = vld [vmem:[%s635_s5 + $0x10] sm:$0xff]  }
   0x6   :  { %v481_v17 = vld [vmem:[%s635_s5 + $0x18] sm:$0xff]   ;;  %v482_v18 = vld [vmem:[%s635_s5 + $0x20] sm:$0xff]   ;;  %v483_v19 = vld [vmem:[%s635_s5 + $0x28] sm:$0xff]  }
   0x7   :  { %421 = vmatpush3.bf16.msra.mxu0 %v469_v2  ;;  %v366_v20 = vld [vmem:[%s636_s2] ss:$0 sm:$0xff]  ;;  %v484_v30 = vld [vmem:[%s635_s5 + $0x30] sm:$0xff]   ;;  %v485_v31 = vld [vmem:[%s635_s5 + $0x38] sm:$0xff]  }
   0x8   :  { %446 = vmatprep.subr.bf16.mxu0 %v494_v0  ;;  %429 = vmatpush3.bf16.msra.mxu1 %v471_v7  ;;  %v370_v32 = vld [vmem:[%s637_s4] ss:$0 sm:$0xff] }
   0x9   :  { %430 = vmatprep.subr.bf16.mxu1 %v494_v0  ;;  %v379_v42 = vld [vmem:[%s638_s6] ss:$0 sm:$0xff] }
   0xa   :  { %423 = vmatmul.mubr.msk.bf16.vlgmr.msra.gmra.mrb[0].mxu0 %vm53_vm1, %v29_v6 }
   0xb   :  { %462 = vmatprep.mubr.msk.bf16.mxu0 %vm495_vm0, %v494_v0  ;;  %447 = vmatpush3.bf16.msra.mxu0 %v478_v14 }
   0xc   :  { %431 = vmatpush3.bf16.msra.mxu1 %v472_v8  ;;  %448 = vmatprep.subr.bf16.mxu0 %v494_v0 }
   0xd   :  { %432 = vmatprep.subr.bf16.mxu1 %v494_v0 }
   0xf   :  { %449 = vmatpush3.bf16.msra.mxu0 %v479_v15 }
  0x10   :  { %433 = vmatpush3.bf16.msra.mxu1 %v473_v9  ;;  %450 = vmatprep.subr.bf16.mxu0 %v494_v0 }
  0x11   :  { %434 = vmatprep.subr.bf16.mxu1 %v494_v0 }
  0x13   :  { %451 = vmatpush3.bf16.msra.mxu0 %v480_v16 }
  0x14   :  { %435 = vmatpush3.bf16.msra.mxu1 %v474_v10  ;;  %452 = vmatprep.subr.bf16.mxu0 %v494_v0 }
  0x15   :  { %436 = vmatprep.subr.bf16.mxu1 %v494_v0 }
  0x17   :  { %453 = vmatpush3.bf16.msra.mxu0 %v481_v17 }
  0x18   :  { %437 = vmatpush3.bf16.msra.mxu1 %v475_v11  ;;  %454 = vmatprep.subr.bf16.mxu0 %v494_v0 }
  0x19   :  { %438 = vmatprep.subr.bf16.mxu1 %v494_v0 }
  0x1b   :  { %455 = vmatpush3.bf16.msra.mxu0 %v482_v18 }
  0x1c   :  { %439 = vmatpush3.bf16.msra.mxu1 %v476_v12  ;;  %456 = vmatprep.subr.bf16.mxu0 %v494_v0 }
  0x1d   :  { %440 = vmatprep.subr.bf16.mxu1 %v494_v0 }
  0x1f   :  { %457 = vmatpush3.bf16.msra.mxu0 %v483_v19 }
  0x20   :  { %441 = vmatpush3.bf16.msra.mxu1 %v477_v13  ;;  %458 = vmatprep.subr.bf16.mxu0 %v494_v0 }
  0x23   :  { %459 = vmatpush3.bf16.msra.mxu0 %v484_v30 }
  0x24   :  { %460 = vmatprep.subr.bf16.mxu0 %v494_v0 }
  0x27   :  { %461 = vmatpush3.bf16.msra.mxu0 %v485_v31 }
  0xdd   :  { %v91_v21 = vpop.f32.mrb[0].mxu0 }
  0xde   :  { %v92_v22 = vadd.f32 %v366_v20, %v91_v21  ;;  %v424_v23 = vpop.f32.mrb[1].mxu0 }
  0xdf   :  { %v94_v24 = vpop.f32.mrb[2].mxu0 }
  0xe0   :  { %v95_v25 = vadd.f32 %v366_v20, %v94_v24  ;;  %v425_v26 = vpop.f32.mrb[3].mxu0  ;;  %v98_v27 = vmax.f32 %v92_v22, 0.0 }
  0xe2   :  { %v99_v28 = vmax.f32 %v95_v25, 0.0 }
  0xe4   :  { %v100_v29 = vpack.c.bf16 %v99_v28, %v98_v27 }
  0xe6   :  { %443 = vmatmul.mubr.bf16.vlgmr.msra.gmra.mrb[0].mxu1 %v100_v29 }
 0x1b9   :  { %v206_v33 = vpop.f32.mrb[0].mxu1 }
 0x1ba   :  { %v207_v34 = vadd.f32 %v370_v32, %v206_v33  ;;  %v444_v35 = vpop.f32.mrb[1].mxu1 }
 0x1bb   :  { %v209_v36 = vpop.f32.mrb[2].mxu1 }
 0x1bc   :  { %v210_v37 = vadd.f32 %v370_v32, %v209_v36  ;;  %v445_v38 = vpop.f32.mrb[3].mxu1  ;;  %v213_v39 = vmax.f32 %v207_v34, 0.0 }
 0x1be   :  { %v214_v40 = vmax.f32 %v210_v37, 0.0 }
 0x1c0   :  { %v215_v41 = vpack.c.bf16 %v214_v40, %v213_v39 }
 0x1c2   :  { %463 = vmatmul.mubr.bf16.vlgmr.msra.gmra.mrb[4].mxu0 %v215_v41 }
 0x295   :  { %v321_v43 = vpop.f32.mrb[4].mxu0 }
 0x296   :  { %v322_v44 = vadd.f32 %v379_v42, %v321_v43  ;;  %v464_v45 = vpop.f32.mrb[5].mxu0 }
 0x297   :  { %v324_v46 = vpop.f32.mrb[6].mxu0 }
 0x298   :  { %328 = vmax.xlane.f32.xlu0 %v322_v44  ;;  %v465_v47 = vpop.f32.mrb[7].mxu0  ;;  %v325_v48 = vadd.f32 %v379_v42, %v324_v46 }
 0x29c   :  { %330 = vmax.xlane.f32.xlu0 %v325_v48 }
 0x325   :  { %v329_v49 = vpop.xlane.xlu0 %328 }
 0x326   :  { %v332_v50 = vsub.f32 %v322_v44, %v329_v49 }
 0x328   :  { %v334_v51 = vmul.f32 1.442695, %v332_v50 }
 0x329   :  { %v331_v52 = vpop.xlane.xlu0 %330 }
 0x32a   :  { %486 = vpow2.f32 %v334_v51  ;;  %v333_v53 = vsub.f32 %v325_v48, %v331_v52 }
 0x32c   :  { %v336_v54 = vmul.f32 1.442695, %v333_v53 }
 0x32e   :  { %488 = vpow2.f32 %v336_v54 }
 0x334   :  { %v487_v55 = vpop.eup %486 }
 0x335   :  { %338 = vadd.xlane.f32.xlu1 %v487_v55 }
 0x338   :  { %v489_v56 = vpop.eup %488 }
 0x339   :  { %340 = vadd.xlane.f32.xlu1 %v489_v56 }
 0x3c2   :  { %v339_v57 = vpop.xlane.xlu1 %338 }
 0x3c3   :  { %490 = vrcp.f32 %v339_v57 }
 0x3c6   :  { %v341_v58 = vpop.xlane.xlu1 %340 }
 0x3c7   :  { %492 = vrcp.f32 %v341_v58 }
 0x3cd   :  { %v491_v59 = vpop.eup %490 }
 0x3ce   :  { %v344_v60 = vmul.f32 %v491_v59, %v339_v57 }
 0x3d0   :  { %v346_v61 = vsub.f32 2.0, %v344_v60 }
 0x3d1   :  { %v493_v62 = vpop.eup %492 }
 0x3d2   :  { %v345_v63 = vmul.f32 %v493_v62, %v341_v58  ;;  %v348_v0 = vmul.f32 %v491_v59, %v346_v61 }
 0x3d4   :  { %v347_v1 = vsub.f32 2.0, %v345_v63  ;;  %v350_v3 = vmul.f32 %v487_v55, %v348_v0 }
 0x3d6   :  { %v349_v2 = vmul.f32 %v493_v62, %v347_v1 }
 0x3d8   :  { %v351_v4 = vmul.f32 %v489_v56, %v349_v2 }
 0x3da   :  { %v395_v5 = vpack.c.bf16 %v351_v4, %v350_v3 }
 0x3dc   :  { %396 = vst [vmem:[%s639_s7] sm:$0xff] %v395_v5  }

</bundles_post_ra>
